<compile_context>
chip_gen: v6e
topology: v6e:2x2x1
jax: 0.10.0
libtpu: 0.0.40
codegen_flags: <defaults>
</compile_context>

<pallas_src>
import functools

import jax
import jax.numpy as jnp
from jax.experimental import pallas as pl
from jax.experimental.pallas import tpu as pltpu

IN_F, H1, H2, OUT_F = 57, 30, 10, 2
PACK_W = H1 + H2 + OUT_F  # 42: [fc1 | fc2 | output] packed on the lane axis


def _mlp_kernel(x_ref, w1_ref, b1_ref, w2_ref, b2_ref, w3_ref, b3_ref, out_ref):
    x = x_ref[...]

    # hidden1: Linear(57, 30) + ReLU   (MXU accumulates in f32)
    fc1 = jnp.dot(x, w1_ref[...], preferred_element_type=jnp.float32) + b1_ref[...]
    fc1 = jnp.maximum(fc1, 0.0)

    # hidden2: Linear(30, 10) + ReLU
    fc2 = jnp.dot(fc1.astype(w2_ref.dtype), w2_ref[...],
                  preferred_element_type=jnp.float32) + b2_ref[...]
    fc2 = jnp.maximum(fc2, 0.0)

    # classifica: Linear(10, 2) + Sigmoid (reciprocal on the EUP slot)
    logits = jnp.dot(fc2.astype(w3_ref.dtype), w3_ref[...],
                     preferred_element_type=jnp.float32) + b3_ref[...]
    sig = pl.reciprocal(1.0 + jnp.exp(-logits), approx=True)

    # Pack all three outputs into a single lane-contiguous slab -> one output
    # DMA stream per grid step instead of three narrow ones.
    out_ref[:, 0:H1] = fc1.astype(out_ref.dtype)
    out_ref[:, H1:H1 + H2] = fc2.astype(out_ref.dtype)
    out_ref[:, H1 + H2:PACK_W] = sig.astype(out_ref.dtype)


def _round_up(x, m):
    return ((x + m - 1) // m) * m


@functools.partial(jax.jit, static_argnames=("block_b", "compute_dtype"))
def mlp_forward(x, params, *, block_b=512, compute_dtype=jnp.float32):
    """Returns (fc1, fc2, output) exactly as the PyTorch module's tensor outputs."""
    w1, b1, w2, b2, w3, b3 = params
    B = x.shape[0]

    # Effective batch tile: multiple of 8 (sublane), no larger than needed for
    # small batches, default 512 for large batches (overhead- / DMA-efficient).
    eff_block = min(_round_up(block_b, 8), _round_up(B, 8))
    Bp = _round_up(B, eff_block)
    if Bp != B:
        x = jnp.pad(x, ((0, Bp - B), (0, 0)))  # pad tail tile; sliced off below

    # Cast read-heavy operands (x, weights) to compute_dtype (e.g. bf16 halves
    # the dominant HBM read traffic); biases + elementwise math stay in f32.
    xc = x.astype(compute_dtype)
    w1c = w1.astype(compute_dtype)
    w2c = w2.astype(compute_dtype)
    w3c = w3.astype(compute_dtype)
    b1f = b1.astype(jnp.float32)
    b2f = b2.astype(jnp.float32)
    b3f = b3.astype(jnp.float32)

    grid = (Bp // eff_block,)

    def batch_map(i):
        return (i, 0)

    def fixed_map(i):
        return (0, 0)

    packed = pl.pallas_call(
        _mlp_kernel,
        grid=grid,
        in_specs=[
            pl.BlockSpec((eff_block, IN_F), batch_map),  # x (tiled on batch)
            pl.BlockSpec((IN_F, H1), fixed_map),         # w1 (full, replicated)
            pl.BlockSpec((1, H1), fixed_map),            # b1
            pl.BlockSpec((H1, H2), fixed_map),           # w2
            pl.BlockSpec((1, H2), fixed_map),            # b2
            pl.BlockSpec((H2, OUT_F), fixed_map),        # w3
            pl.BlockSpec((1, OUT_F), fixed_map),         # b3
        ],
        out_specs=pl.BlockSpec((eff_block, PACK_W), batch_map),
        out_shape=jax.ShapeDtypeStruct((Bp, PACK_W), jnp.float32),
        compiler_params=pltpu.CompilerParams(
            dimension_semantics=("parallel",)),  # batch axis -> both TCs on v7x
    )(xc, w1c, b1f, w2c, b2f, w3c, b3f)

    packed = packed[:B]
    fc1 = packed[:, 0:H1]
    fc2 = packed[:, H1:H1 + H2]
    out = packed[:, H1 + H2:PACK_W]
    return fc1, fc2, out


def init_params(key):
    """Deterministic init mimicking nn.Linear default (uniform +/- 1/sqrt(fan_in))."""
    def linear(key, fan_in, fan_out):
        kw, kb = jax.random.split(key)
        bound = 1.0 / jnp.sqrt(fan_in)
        w = jax.random.uniform(kw, (fan_in, fan_out), jnp.float32, -bound, bound)
        b = jax.random.uniform(kb, (1, fan_out), jnp.float32, -bound, bound)
        return w, b

    k1, k2, k3 = jax.random.split(key, 3)
    w1, b1 = linear(k1, IN_F, H1)
    w2, b2 = linear(k2, H1, H2)
    w3, b3 = linear(k3, H2, OUT_F)
    return (w1, b1, w2, b2, w3, b3)


def reference_forward(x, params):
    w1, b1, w2, b2, w3, b3 = params
    fc1 = jnp.maximum(x @ w1 + b1, 0.0)
    fc2 = jnp.maximum(fc1 @ w2 + b2, 0.0)
    out = jax.nn.sigmoid(fc2 @ w3 + b3)
    return fc1, fc2, out


if __name__ == "__main__":
    key = jax.random.PRNGKey(0)
    kx, kp = jax.random.split(key)
    params = init_params(kp)

    # --- small batch, f32 path: tight correctness check -----------------------
    batch = 8
    x = jax.random.normal(kx, (batch, IN_F), jnp.float32)

    fc1, fc2, out = mlp_forward(x, params, block_b=512, compute_dtype=jnp.float32)
    jax.block_until_ready((fc1, fc2, out))

    # best-effort stand-in for the buggy `prob = nn.Softmax(fc2)` line (glue, not hot path)
    prob = jax.nn.softmax(fc2, axis=-1)
    jax.block_until_ready(prob)

    r_fc1, r_fc2, r_out = reference_forward(x, params)
    assert jnp.allclose(fc1, r_fc1, atol=1e-5), "fc1 mismatch"
    assert jnp.allclose(fc2, r_fc2, atol=1e-5), "fc2 mismatch"
    # output uses the approximate EUP reciprocal -> slightly looser tolerance
    assert jnp.allclose(out, r_out, atol=2e-3), "output mismatch"

    # --- ragged batch + bf16 path: exercises tail padding and reduced HBM read --
    batch2 = 13
    x2 = jax.random.normal(jax.random.fold_in(kx, 1), (batch2, IN_F), jnp.float32)
    fc1b, fc2b, outb = mlp_forward(x2, params, block_b=512,
                                   compute_dtype=jnp.bfloat16)
    jax.block_until_ready((fc1b, fc2b, outb))
    rb_fc1, rb_fc2, rb_out = reference_forward(x2, params)
    assert fc1b.shape == (batch2, H1) and outb.shape == (batch2, OUT_F)
    assert jnp.allclose(fc1b, rb_fc1, atol=1e-1), "bf16 fc1 mismatch"
    assert jnp.allclose(fc2b, rb_fc2, atol=1e-1), "bf16 fc2 mismatch"
    assert jnp.allclose(outb, rb_out, atol=1e-1), "bf16 output mismatch"

    print("KERNEL_OK")
</pallas_src>

<mosaic_0001>
module attributes {stable_mosaic.version = 11 : i64} {
  func.func @_mlp_kernel(%arg0: i32, %arg1: memref<8x57xf32, #tpu.memory_space<vmem>>, %arg2: memref<57x30xf32, #tpu.memory_space<vmem>>, %arg3: memref<1x30xf32, #tpu.memory_space<vmem>>, %arg4: memref<30x10xf32, #tpu.memory_space<vmem>>, %arg5: memref<1x10xf32, #tpu.memory_space<vmem>>, %arg6: memref<10x2xf32, #tpu.memory_space<vmem>>, %arg7: memref<1x2xf32, #tpu.memory_space<vmem>>, %arg8: memref<8x42xf32, #tpu.memory_space<vmem>>) attributes {dimension_semantics = [#tpu.dimension_semantics<parallel>], iteration_bounds = array<i64: 1>, scalar_prefetch = 0 : i64, scratch_operands = 0 : i64, tpu.core_type = #tpu.core_type<tc>, window_params = [{transform_indices = @transform_0, window_bounds = array<i64: 8, 57>}, {pipeline_mode = #tpu.pipeline_mode<synchronous>, transform_indices = @transform_1, window_bounds = array<i64: 57, 30>}, {pipeline_mode = #tpu.pipeline_mode<synchronous>, transform_indices = @transform_2, window_bounds = array<i64: 1, 30>}, {pipeline_mode = #tpu.pipeline_mode<synchronous>, transform_indices = @transform_3, window_bounds = array<i64: 30, 10>}, {pipeline_mode = #tpu.pipeline_mode<synchronous>, transform_indices = @transform_4, window_bounds = array<i64: 1, 10>}, {pipeline_mode = #tpu.pipeline_mode<synchronous>, transform_indices = @transform_5, window_bounds = array<i64: 10, 2>}, {pipeline_mode = #tpu.pipeline_mode<synchronous>, transform_indices = @transform_6, window_bounds = array<i64: 1, 2>}, {transform_indices = @transform_7, window_bounds = array<i64: 8, 42>}]} {
    %c0 = arith.constant 0 : index
    %c0_0 = arith.constant 0 : index
    %0 = vector.load %arg1[%c0, %c0_0] : memref<8x57xf32, #tpu.memory_space<vmem>>, vector<8x57xf32>
    %c0_1 = arith.constant 0 : index
    %c0_2 = arith.constant 0 : index
    %1 = vector.load %arg2[%c0_1, %c0_2] : memref<57x30xf32, #tpu.memory_space<vmem>>, vector<57x30xf32>
    %cst = arith.constant dense<0.000000e+00> : vector<8x30xf32>
    %2 = tpu.matmul %0, %1, %cst {dimension_numbers = #tpu.dot_dimension_numbers<[1], [0], [0], [1], [0, 0, 1, 1], [], []>} : vector<8x57xf32>, vector<57x30xf32>, vector<8x30xf32> -> vector<8x30xf32>
    %c0_3 = arith.constant 0 : index
    %c0_4 = arith.constant 0 : index
    %3 = vector.load %arg3[%c0_3, %c0_4] : memref<1x30xf32, #tpu.memory_space<vmem>>, vector<1x30xf32>
    %4 = vector.broadcast %3 : vector<1x30xf32> to vector<8x30xf32>
    %5 = arith.addf %2, %4 : vector<8x30xf32>
    %cst_5 = arith.constant 0.000000e+00 : f32
    %6 = vector.broadcast %cst_5 : f32 to vector<8x30xf32>
    %7 = arith.maximumf %5, %6 : vector<8x30xf32>
    %c0_6 = arith.constant 0 : index
    %c0_7 = arith.constant 0 : index
    %8 = vector.load %arg4[%c0_6, %c0_7] : memref<30x10xf32, #tpu.memory_space<vmem>>, vector<30x10xf32>
    %cst_8 = arith.constant dense<0.000000e+00> : vector<8x10xf32>
    %9 = tpu.matmul %7, %8, %cst_8 {dimension_numbers = #tpu.dot_dimension_numbers<[1], [0], [0], [1], [0, 0, 1, 1], [], []>} : vector<8x30xf32>, vector<30x10xf32>, vector<8x10xf32> -> vector<8x10xf32>
    %c0_9 = arith.constant 0 : index
    %c0_10 = arith.constant 0 : index
    %10 = vector.load %arg5[%c0_9, %c0_10] : memref<1x10xf32, #tpu.memory_space<vmem>>, vector<1x10xf32>
    %11 = vector.broadcast %10 : vector<1x10xf32> to vector<8x10xf32>
    %12 = arith.addf %9, %11 : vector<8x10xf32>
    %cst_11 = arith.constant 0.000000e+00 : f32
    %13 = vector.broadcast %cst_11 : f32 to vector<8x10xf32>
    %14 = arith.maximumf %12, %13 : vector<8x10xf32>
    %c0_12 = arith.constant 0 : index
    %c0_13 = arith.constant 0 : index
    %15 = vector.load %arg6[%c0_12, %c0_13] : memref<10x2xf32, #tpu.memory_space<vmem>>, vector<10x2xf32>
    %cst_14 = arith.constant dense<0.000000e+00> : vector<8x2xf32>
    %16 = tpu.matmul %14, %15, %cst_14 {dimension_numbers = #tpu.dot_dimension_numbers<[1], [0], [0], [1], [0, 0, 1, 1], [], []>} : vector<8x10xf32>, vector<10x2xf32>, vector<8x2xf32> -> vector<8x2xf32>
    %c0_15 = arith.constant 0 : index
    %c0_16 = arith.constant 0 : index
    %17 = vector.load %arg7[%c0_15, %c0_16] : memref<1x2xf32, #tpu.memory_space<vmem>>, vector<1x2xf32>
    %18 = vector.broadcast %17 : vector<1x2xf32> to vector<8x2xf32>
    %19 = arith.addf %16, %18 : vector<8x2xf32>
    %cst_17 = arith.constant 0.000000e+00 : f32
    %20 = vector.broadcast %cst_17 : f32 to vector<8x2xf32>
    %21 = arith.subf %20, %19 : vector<8x2xf32>
    %22 = math.exp %21 : vector<8x2xf32>
    %cst_18 = arith.constant 1.000000e+00 : f32
    %23 = vector.broadcast %cst_18 : f32 to vector<8x2xf32>
    %24 = arith.addf %23, %22 : vector<8x2xf32>
    %25 = tpu.reciprocal %24 {approx = true} : vector<8x2xf32> -> vector<8x2xf32>
    %c0_19 = arith.constant 0 : index
    %c0_20 = arith.constant 0 : index
    %26 = vector.load %arg8[%c0_19, %c0_20] : memref<8x42xf32, #tpu.memory_space<vmem>>, vector<8x30xf32>
    tpu.vector_store %arg8[%c0_19, %c0_20], %7 {strides = array<i32>} : memref<8x42xf32, #tpu.memory_space<vmem>>, vector<8x30xf32>,
    %c0_21 = arith.constant 0 : index
    %c30 = arith.constant 30 : index
    %27 = vector.load %arg8[%c0_21, %c30] : memref<8x42xf32, #tpu.memory_space<vmem>>, vector<8x10xf32>
    tpu.vector_store %arg8[%c0_21, %c30], %14 {strides = array<i32>} : memref<8x42xf32, #tpu.memory_space<vmem>>, vector<8x10xf32>,
    %c0_22 = arith.constant 0 : index
    %c40 = arith.constant 40 : index
    %28 = vector.load %arg8[%c0_22, %c40] : memref<8x42xf32, #tpu.memory_space<vmem>>, vector<8x2xf32>
    tpu.vector_store %arg8[%c0_22, %c40], %25 {strides = array<i32>} : memref<8x42xf32, #tpu.memory_space<vmem>>, vector<8x2xf32>,
    return
  }
  func.func @transform_0(%arg0: i32) -> (i32, i32) {
    %c0_i32 = arith.constant 0 : i32
    %c0_i32_0 = arith.constant 0 : i32
    return %arg0, %c0_i32 : i32, i32
  }
  func.func @transform_1(%arg0: i32) -> (i32, i32) {
    %c0_i32 = arith.constant 0 : i32
    %c0_i32_0 = arith.constant 0 : i32
    %c0_i32_1 = arith.constant 0 : i32
    return %c0_i32, %c0_i32_0 : i32, i32
  }
  func.func @transform_2(%arg0: i32) -> (i32, i32) {
    %c0_i32 = arith.constant 0 : i32
    %c0_i32_0 = arith.constant 0 : i32
    %c0_i32_1 = arith.constant 0 : i32
    return %c0_i32, %c0_i32_0 : i32, i32
  }
  func.func @transform_3(%arg0: i32) -> (i32, i32) {
    %c0_i32 = arith.constant 0 : i32
    %c0_i32_0 = arith.constant 0 : i32
    %c0_i32_1 = arith.constant 0 : i32
    return %c0_i32, %c0_i32_0 : i32, i32
  }
  func.func @transform_4(%arg0: i32) -> (i32, i32) {
    %c0_i32 = arith.constant 0 : i32
    %c0_i32_0 = arith.constant 0 : i32
    %c0_i32_1 = arith.constant 0 : i32
    return %c0_i32, %c0_i32_0 : i32, i32
  }
  func.func @transform_5(%arg0: i32) -> (i32, i32) {
    %c0_i32 = arith.constant 0 : i32
    %c0_i32_0 = arith.constant 0 : i32
    %c0_i32_1 = arith.constant 0 : i32
    return %c0_i32, %c0_i32_0 : i32, i32
  }
  func.func @transform_6(%arg0: i32) -> (i32, i32) {
    %c0_i32 = arith.constant 0 : i32
    %c0_i32_0 = arith.constant 0 : i32
    %c0_i32_1 = arith.constant 0 : i32
    return %c0_i32, %c0_i32_0 : i32, i32
  }
  func.func @transform_7(%arg0: i32) -> (i32, i32) {
    %c0_i32 = arith.constant 0 : i32
    %c0_i32_0 = arith.constant 0 : i32
    return %arg0, %c0_i32 : i32, i32
  }
}

</mosaic_0001>

<bundles_post_ra>
// kernel: mlp_forward.1
= control target key start
LH: loop header
LB: loop body
LE: loop exit
PB: predicated region body
PF: predicated region fallthrough
CT: control target
= control target key end

     0   :  { %vm46_vm0 = vcmask 1040384   ;;  %v390_v0 = vmov 0.0   ;;  %vm391_vm1 = vmmov 0   ;;  %vm136_vm2 = vcmask 1045504   ;;  %s392_s10 = smov 30   ;;  %s500_s1 = inlined_call_operand.vmem [shape: f32[57,30], index: 1, kind: input, shape index: {}]   ;;  %s501_s3 = inlined_call_operand.vmem [shape: f32[30,10], index: 3, kind: input, shape index: {}]   ;;  %s502_s0 = inlined_call_operand.vmem [shape: f32[8,57], index: 0, kind: input, shape index: {}]   ;;  %s503_s2 = inlined_call_operand.vmem [shape: f32[1,30], index: 2, kind: input, shape index: {}]   ;;  %s504_s7 = inlined_call_operand.vmem [shape: f32[8,42], index: 7, kind: output, shape index: {}]   ;;  %s505_s5 = inlined_call_operand.vmem [shape: f32[10,2], index: 5, kind: input, shape index: {}]   ;;  %s506_s4 = inlined_call_operand.vmem [shape: f32[1,10], index: 4, kind: input, shape index: {}]   ;;  %s507_s6 = inlined_call_operand.vmem [shape: f32[1,2], index: 6, kind: input, shape index: {}]  }
   0x1   :  { %345 = vmatprep.subr.mxu0 %v390_v0  ;;  %v34_v1 = vld [vmem:[%s500_s1 + $0x38] sm:$0x1]  ;;  %v33_v2 = vld [vmem:[%s500_s1 + $0x30] sm:$0xff]  ;;  %361 = vmatprep.mubr.msk.f32.mxu0 %vm391_vm1, %v390_v0  ;;  %v32_v3 = vld [vmem:[%s500_s1 + $0x28] sm:$0xff]  ;;  %vm42_vm3 = vcmask 465920   ;;  %vm132_vm4 = vcmask 244736  }
   0x2   :  { %346 = vmatpush3.msk.msra.mxu0 %vm46_vm0, %v34_v1  ;;  %364 = vmatprep.subr.mxu1 %v390_v0  ;;  %v124_v4 = vld [vmem:[%s501_s3 + $0x18] sm:$0x3f]  ;;  %v31_v5 = vld [vmem:[%s500_s1 + $0x20] sm:$0xff]  ;;  %v29_v7 = vld [vmem:[%s500_s1 + $0x10] sm:$0xff]  ;;  %vm224_vm5 = vcmask 1041408   ;;  %vm220_vm6 = vcmask 80896  }
   0x3   :  { %347 = vmatprep.subr.mxu0 %v390_v0  ;;  %372 = vmatprep.mubr.msk.f32.mxu1 %vm391_vm1, %v390_v0  ;;  %v30_v6 = vld [vmem:[%s500_s1 + $0x18] sm:$0xff]  ;;  %v28_v8 = vld [vmem:[%s500_s1 + $0x8] sm:$0xff]  ;;  %v27_v9 = vld [vmem:[%s500_s1] sm:$0xff]  ;;  %vm307_vm7 = vcmask 326896   ;;  %vm313_vm8 = vcmask 343360  }
   0x4   :  { %348 = vmatpush3.msra.mxu0 %v33_v2  ;;  %365 = vmatpush3.msk.msra.mxu1 %vm136_vm2, %v124_v4  ;;  %v26_v10 = vld [vmem:[%s502_s0] sm:$0xff]  ;;  %v123_v11 = vld [vmem:[%s501_s3 + $0x10] sm:$0xff]  ;;  %v122_v12 = vld [vmem:[%s501_s3 + $0x8] sm:$0xff] }
   0x5   :  { %349 = vmatprep.subr.mxu0 %v390_v0  ;;  %366 = vmatprep.subr.mxu1 %v390_v0  ;;  %v121_v13 = vld [vmem:[%s501_s3] sm:$0xff]  ;;  %v212_v19 = vld [vmem:[%s505_s5 + $0x8] sm:$0x3] }
   0x6   :  { %350 = vmatpush3.msra.mxu0 %v32_v3  ;;  %367 = vmatpush3.msra.mxu1 %v123_v11  ;;  %v319_v14 = vld [vmem:[%s503_s2] ss:$0 sm:$0xff] }
   0x7   :  { %351 = vmatprep.subr.mxu0 %v390_v0  ;;  %368 = vmatprep.subr.mxu1 %v390_v0  ;;  %v211_v20 = vld [vmem:[%s505_s5] sm:$0xff] }
   0x8   :  { %352 = vmatpush3.msra.mxu0 %v31_v5  ;;  %369 = vmatpush3.msra.mxu1 %v122_v12  ;;  %v322_v21 = vld [vmem:[%s506_s4] ss:$0 sm:$0xff]  ;;  %s393_s4 = smov 40  }
   0x9   :  { %353 = vmatprep.subr.mxu0 %v390_v0  ;;  %370 = vmatprep.subr.mxu1 %v390_v0  ;;  %v325_v27 = vld [vmem:[%s507_s6] ss:$0 sm:$0xff] }
   0xa   :  { %354 = vmatpush3.msra.mxu0 %v30_v6  ;;  %371 = vmatpush3.msra.mxu1 %v121_v13 }
   0xb   :  { %355 = vmatprep.subr.mxu0 %v390_v0  ;;  %375 = vmatprep.subr.mxu1 %v390_v0 }
   0xc   :  { %356 = vmatpush3.msra.mxu0 %v29_v7 }
   0xd   :  { %357 = vmatprep.subr.mxu0 %v390_v0 }
   0xe   :  { %358 = vmatpush3.msra.mxu0 %v28_v8 }
   0xf   :  { %359 = vmatprep.subr.mxu0 %v390_v0 }
  0x10   :  { %360 = vmatpush3.msra.mxu0 %v27_v9 }
  0x11   :  { %362 = vmatmul.mubr.msk.f32.vlgmr.msra.gmra.mxu0 %vm42_vm3, %v26_v10 }
  0xd1   :  { %v116_v15 = vpop.f32.mrf.mxu0 }
  0xd2   :  { %v117_v16 = vadd.f32 %v319_v14, %v116_v15 }
  0xd3   :  { %v363_v17 = vpop.f32.mrf.mxu0 }
  0xd4   :  { %v120_v18 = vmax.f32 %v117_v16, 0.0 }
  0xd6   :  { %373 = vmatmul.mubr.msk.f32.vlgmr.msra.gmra.mxu1 %vm132_vm4, %v120_v18  ;;  %303 = vst.msk [vmem:[%s504_s7] sm:$0xff] %vm132_vm4, %v120_v18 }
  0xd7   :  { %379 = vmatprep.mubr.msk.f32.mxu1 %vm391_vm1, %v390_v0  ;;  %376 = vmatpush3.msk.msra.mxu1 %vm224_vm5, %v212_v19 }
  0xd8   :  { %377 = vmatprep.subr.mxu1 %v390_v0 }
  0xd9   :  { %378 = vmatpush3.msra.mxu1 %v211_v20 }
 0x196   :  { %v206_v22 = vpop.f32.mrf.mxu1 }
 0x197   :  { %v207_v23 = vadd.f32 %v322_v21, %v206_v22 }
 0x198   :  { %v374_v24 = vpop.f32.mrf.mxu1 }
 0x199   :  { %v210_v25 = vmax.f32 %v207_v23, 0.0 }
 0x19b   :  { %304 = vrot.lane.b32.xlu0 %v210_v25, %s392_s10  ;;  %380 = vmatmul.mubr.msk.f32.vlgmr.msra.gmra.mxu1 %vm220_vm6, %v210_v25 }
 0x20d   :  { %v305_v26 = vpop.permute.xlu0 %304 }
 0x20e   :  { %308 = vst.msk [vmem:[%s504_s7] sm:$0xff] %vm307_vm7, %v305_v26 }
 0x25b   :  { %v294_v28 = vpop.f32.mrf.mxu1 }
 0x25c   :  { %v295_v29 = vadd.f32 %v325_v27, %v294_v28 }
 0x25d   :  { %v381_v30 = vpop.f32.mrf.mxu1 }
 0x25e   :  { %v298_v31 = vsub.f32 0.0, %v295_v29 }
 0x260   :  { %v299_v32 = vmul.f32 1.442695, %v298_v31 }
 0x262   :  { %386 = vpow2.f32 %v299_v32 }
 0x26f   :  { %v387_v33 = vpop.eup %386 }
 0x270   :  { %v301_v34 = vadd.f32 1.0, %v387_v33 }
 0x272   :  { %388 = vrcp.f32 %v301_v34 }
 0x27f   :  { %v389_v35 = vpop.eup %388 }
 0x280   :  { %310 = vrot.lane.b32.xlu0 %v389_v35, %s393_s4 }
 0x2f2   :  { %v311_v36 = vpop.permute.xlu0 %310 }
 0x2f3   :  { %314 = vst.msk [vmem:[%s504_s7] sm:$0xff] %vm313_vm8, %v311_v36 }

</bundles_post_ra>
